<compile_context>
chip_gen: v6e
topology: v6e:2x2x1
jax: 0.10.0
libtpu: 0.0.40
codegen_flags: <defaults>
</compile_context>

<pallas_src>
import jax
import jax.numpy as jnp
import numpy as np
from jax import lax
from jax.experimental import pallas as pl
from jax.experimental.pallas import tpu as pltpu

_LANES = 128
_VMEM_BUDGET = 32 << 20    # target per-step VMEM working set (safe on v7x 64 MiB)
_VMEM_LIMIT = 48 << 20     # scoped VMEM limit handed to Mosaic


def _round_up(x: int, m: int) -> int:
    return (x + m - 1) // m * m


def _on_multicore_chip() -> bool:
    # v7x has 2 TensorCores per chip; v5e/v6e have 1.
    try:
        return "v7" in jax.devices()[0].device_kind.lower()
    except Exception:
        return False


def _argmax_rows_kernel(x_ref, idx_ref):
    """First-occurrence argmax along the class (last) axis of a (TB, C) tile.

    Result is written as a lane-dense (1, TB) int32 row.
    """
    x = x_ref[...]                                    # (TB, C) tile, native dtype
    TB, C = x.shape
    iota = lax.broadcasted_iota(jnp.int32, (TB, C), 1)

    if x.dtype == jnp.bool_:
        val_bits = 1
    elif jnp.issubdtype(x.dtype, jnp.integer):
        val_bits = 8 * x.dtype.itemsize
    else:
        val_bits = None                               # float path
    shift = pl.next_power_of_2(C)                     # static Python int

    if val_bits is not None and shift <= (1 << (30 - val_bits)):
        # Single-pass packed-key argmax.  Among positions holding the row max,
        # the largest (C-1-iota) is the smallest iota -> first-max tie-break,
        # identical to torch.argmax.  No int32 overflow: |x|*shift + shift <= 2^30,
        # and correct for negative values (low k bits of x*2^k are zero).
        key = x.astype(jnp.int32) * shift + (jnp.int32(C - 1) - iota)
        key_max = jnp.max(key, axis=-1, keepdims=True)            # (TB, 1)
        idx = jnp.int32(C - 1) - (key_max & jnp.int32(shift - 1))  # (TB, 1)
        idx_ref[...] = idx.reshape(1, TB)
    else:
        # Two-pass fallback (floats / wide ints): row max, then first index of max.
        # Note: an all-NaN float row yields C (torch.argmax would return the NaN
        # position); irrelevant for one-hot inputs.
        xs = x
        if jnp.issubdtype(x.dtype, jnp.floating) and x.dtype.itemsize < 4:
            xs = xs.astype(jnp.float32)               # widen on-chip (v5e VPU has no bf16)
        mx = jnp.max(xs, axis=-1, keepdims=True)      # (TB, 1), native/f32
        cand = jnp.where(xs == mx, iota, jnp.int32(C))
        idx = jnp.min(cand, axis=-1)                  # (TB,)
        idx_ref[...] = idx.reshape(1, TB)


def onehot_to_indices_pallas(onehot: jax.Array, *,
                             vmem_budget: int = _VMEM_BUDGET,
                             core_parallel=None) -> jax.Array:
    """onehot: [B, C] (bool / int / float, native dtype). Returns int32 indices [B]."""
    B, C = onehot.shape
    dtype = onehot.dtype
    esize = dtype.itemsize

    # Per-batch-row VMEM cost with lane padding (last dim < 128 still occupies
    # 128 lanes in VMEM): double-buffered input + int32 key/cand + iota temps
    # (+ f32 widen for sub-f32 floats).
    C_pad = _round_up(C, _LANES)
    temp_bytes = 8 * C_pad
    if jnp.issubdtype(dtype, jnp.floating) and esize < 4:
        temp_bytes += 4 * C_pad
    row_vmem = 2 * C_pad * esize + temp_bytes

    if B * row_vmem <= vmem_budget:
        TB = B                                        # one block == full array dims
    else:
        TB = max(_LANES, (vmem_budget // row_vmem) // _LANES * _LANES)
        if TB >= B:                                   # degenerate tiny-B / huge-C case
            TB = B
    grid = (pl.cdiv(B, TB),)                          # partial last block handled by Pallas
    # TODO(synk): for very wide C a second "arbitrary" grid axis over C with a
    # running best-key scratch (finalized via pl.when) would keep TB large;
    # single-axis version kept here.

    if core_parallel is None:
        core_parallel = grid[0] >= 2 and _on_multicore_chip()
    dim_sem = (pltpu.CORE_PARALLEL,) if core_parallel else ("parallel",)

    out = pl.pallas_call(
        _argmax_rows_kernel,
        out_shape=jax.ShapeDtypeStruct((1, B), jnp.int32),
        grid=grid,
        in_specs=[pl.BlockSpec((TB, C), lambda i: (i, 0))],
        out_specs=pl.BlockSpec((1, TB), lambda i: (0, i)),
        compiler_params=pltpu.CompilerParams(
            dimension_semantics=dim_sem,
            vmem_limit_bytes=_VMEM_LIMIT,
        ),
        cost_estimate=pl.CostEstimate(
            flops=3 * B * C,
            transcendentals=0,
            bytes_accessed=B * C * esize + 4 * B,
        ),
    )(onehot)
    return out[0]


class OneHotToNames:
    """JAX/Pallas equivalent of torchoutil's OneHotToNames."""

    def __init__(self, idx_to_name):
        self.idx_to_name = idx_to_name

    def __call__(self, onehot: jax.Array):
        indices = onehot_to_indices_pallas(onehot)
        idx_host = np.asarray(indices)                # single device->host transfer
        # TODO(synk): mapping device ints to arbitrary Python objects (names) has no
        # device representation; this dict lookup stays host-side by necessity.
        return [self.idx_to_name[i] for i in idx_host.tolist()]


if __name__ == "__main__":
    # Small demo matching the module's forward (bool one-hot -> packed-key path).
    B, C = 8, 16
    key = jax.random.PRNGKey(0)
    labels = jax.random.randint(key, (B,), 0, C)
    onehot = jax.nn.one_hot(labels, C) > 0            # bool one-hot, shape [B, C]

    idx_to_name = {i: f"class_{i}" for i in range(C)}
    module = OneHotToNames(idx_to_name)

    idx = onehot_to_indices_pallas(onehot)
    jax.block_until_ready(idx)

    names = module(onehot)
    expected = [f"class_{i}" for i in np.asarray(labels).tolist()]
    assert names == expected, (names, expected)

    # Multi-tile path: grid > 1 with a partial last batch block, no jnp.pad
    # (tiny vmem_budget only to force tiling at test scale).
    B2, C2 = 520, 300
    labels2 = jax.random.randint(jax.random.PRNGKey(1), (B2,), 0, C2)
    onehot2 = jax.nn.one_hot(labels2, C2) > 0
    idx2 = onehot_to_indices_pallas(onehot2, vmem_budget=1 << 16)
    jax.block_until_ready(idx2)
    np.testing.assert_array_equal(np.asarray(idx2), np.asarray(labels2))

    # Float fallback path (bf16 on the wire, widened to f32 on-chip).
    B3, C3 = 16, 40
    labels3 = jax.random.randint(jax.random.PRNGKey(2), (B3,), 0, C3)
    onehot3 = jax.nn.one_hot(labels3, C3, dtype=jnp.bfloat16)
    idx3 = onehot_to_indices_pallas(onehot3)
    jax.block_until_ready(idx3)
    np.testing.assert_array_equal(np.asarray(idx3), np.asarray(labels3))

    print("KERNEL_OK")
</pallas_src>

<mosaic_0001>
module attributes {stable_mosaic.version = 11 : i64} {
  func.func @_argmax_rows_kernel(%arg0: i32, %arg1: memref<8x16xi32, #tpu.memory_space<vmem>>, %arg2: memref<1x8xi32, #tpu.memory_space<vmem>>) attributes {dimension_semantics = [#tpu.dimension_semantics<parallel>], iteration_bounds = array<i64: 1>, scalar_prefetch = 0 : i64, scratch_operands = 0 : i64, tpu.core_type = #tpu.core_type<tc>, window_params = [{transform_indices = @transform_0, window_bounds = array<i64: 8, 16>}, {transform_indices = @transform_1, window_bounds = array<i64: 1, 8>}]} {
    %c0 = arith.constant 0 : index
    %c0_0 = arith.constant 0 : index
    %0 = vector.load %arg1[%c0, %c0_0] : memref<8x16xi32, #tpu.memory_space<vmem>>, vector<8x16xi32>
    %cst = arith.constant dense<0> : vector<8x16xi32>
    %1 = arith.cmpi ne, %0, %cst : vector<8x16xi32>
    %2 = tpu.iota {dimensions = array<i32: 1>} : vector<8x16xi32>
    %3 = arith.extui %1 : vector<8x16xi1> to vector<8x16xi32>
    %c16_i32 = arith.constant 16 : i32
    %4 = vector.broadcast %c16_i32 : i32 to vector<8x16xi32>
    %5 = arith.muli %3, %4 : vector<8x16xi32>
    %c15_i32 = arith.constant 15 : i32
    %6 = vector.broadcast %c15_i32 : i32 to vector<8x16xi32>
    %7 = arith.subi %6, %2 : vector<8x16xi32>
    %8 = arith.addi %5, %7 : vector<8x16xi32>
    %cst_1 = arith.constant dense<-2147483648> : vector<8xi32>
    %9 = vector.multi_reduction <maxsi>, %8, %cst_1 [1] : vector<8x16xi32> to vector<8xi32>
    %10 = vector.shape_cast %9 : vector<8xi32> to vector<8x1xi32>
    %c15_i32_2 = arith.constant 15 : i32
    %11 = vector.broadcast %c15_i32_2 : i32 to vector<8x1xi32>
    %12 = arith.andi %10, %11 : vector<8x1xi32>
    %c15_i32_3 = arith.constant 15 : i32
    %13 = vector.broadcast %c15_i32_3 : i32 to vector<8x1xi32>
    %14 = arith.subi %13, %12 : vector<8x1xi32>
    %15 = vector.shape_cast %14 : vector<8x1xi32> to vector<1x8xi32>
    %c0_4 = arith.constant 0 : index
    %c0_5 = arith.constant 0 : index
    %16 = vector.load %arg2[%c0_4, %c0_5] : memref<1x8xi32, #tpu.memory_space<vmem>>, vector<1x8xi32>
    tpu.vector_store %arg2[%c0_4, %c0_5], %15 {strides = array<i32>} : memref<1x8xi32, #tpu.memory_space<vmem>>, vector<1x8xi32>,
    return
  }
  func.func @transform_0(%arg0: i32) -> (i32, i32) {
    %c0_i32 = arith.constant 0 : i32
    %c0_i32_0 = arith.constant 0 : i32
    return %arg0, %c0_i32 : i32, i32
  }
  func.func @transform_1(%arg0: i32) -> (i32, i32) {
    %c0_i32 = arith.constant 0 : i32
    %c0_i32_0 = arith.constant 0 : i32
    return %c0_i32, %arg0 : i32, i32
  }
}

</mosaic_0001>

<bundles_post_ra>
// kernel: tpu_custom_call.1
= control target key start
LH: loop header
LB: loop body
LE: loop exit
PB: predicated region body
PF: predicated region fallthrough
CT: control target
= control target key end

     0   :  { %v11_v1 = vlaneseq  ;;  %s97_s0 = inlined_call_operand.vmem [shape: s32[8,16], index: 0, kind: input, shape index: {}]   ;;  %s98_s1 = inlined_call_operand.hbm [shape: s32[1,8], index: 1, kind: output, shape index: {}]  }
   0x1   :  { %v9_v0 = vld [vmem:[%s97_s0] sm:$0xff] }
   0x2   :  { %6 = vsyncpa [#allocation3], 0  ;;  %vm10_vm0 = vcmp.ne.s32.totalorder %v9_v0, 0  ;;  %v12_v2 = vand.u32 127, %v11_v1  ;;  %v79_v3 = vmov 0   ;;  %vm17_vm1 = vcmask 130048  }
   0x3   :  { %v13_v4 = vsel %vm10_vm0, 1, %v79_v3  ;;  %v36_v19 = vshrl.u32 %v11_v1, 7  ;;  %s80_s0 = smov [#allocation2]   ;;  %vm39_vm3 = vcmask 57344  }
   0x4   :  { %v14_v5 = vmul.u32 16, %v13_v4  ;;  %v15_v6 = vsub.s32 15, %v12_v2  ;;  %s47_s8 = sshll.u32 %s80_s0, 4  ;;  %s48_s8 = int_to_ptr.vmem [resolvable:$true] %s47_s8 }
   0x5   :  { %v37_v22 = vsub.s32 %v12_v2, %v36_v19  ;;  %s57_s9 = scalar_lea.vmem %s48_s8, 16  ;;  %s61_s10 = scalar_lea.vmem %s48_s8, 32 }
   0x6   :  { %v16_v7 = vadd.s32 %v15_v6, %v14_v5  ;;  %p58_p0 = scmp.ne.s32.totalorder %s48_s8, %s57_s9  ;;  %p62_p1 = scmp.lt.s32.totalorder %s48_s8, %s48_s8 }
   0x7   :  { %p63_p2 = scmp.lt.s32.totalorder %s61_s10, %s57_s9 }
   0x8   :  { %v18_v8 = vsel %vm17_vm1, %v16_v7, 2147483648 }
   0x9   :  { %v20_v9 = vshra.s32 %v18_v8, 16  ;;  %v19_v11 = vand.u32 65535, %v18_v8  ;;  %p64_p3 = por %p63_p2, %p62_p1 }
   0xb   :  { %v22_v10 = vcvt.s32.f32 %v20_v9  ;;  %v21_v12 = vcvt.s32.f32 %v19_v11  ;;  %p65_p4 = pnand %p64_p3, %p58_p0 }
   0xd   :  { %23 = vmax.xlane.f32.xlu0 %v22_v10 }
  0x96   :  { %v24_v13 = vpop.xlane.xlu0 %23 }
  0x97   :  { %vm25_vm2 = vcmp.eq.f32.partialorder %v22_v10, %v24_v13  ;;  %v30_v15 = vcvt.f32.s32 %v24_v13 }
  0x98   :  { %v26_v14 = vsel %vm25_vm2, %v21_v12, -inf }
  0x99   :  { %27 = vmax.xlane.f32.xlu0 %v26_v14  ;;  %v31_v17 = vshll.u32 %v30_v15, 16 }
 0x122   :  { %v28_v16 = vpop.xlane.xlu0 %27 }
 0x123   :  { %v29_v18 = vcvt.f32.s32 %v28_v16 }
 0x125   :  { %v32_v20 = vadd.s32 %v31_v17, %v29_v18 }
 0x127   :  { %v33_v21 = vand.u32 15, %v32_v20 }
 0x129   :  { %v34_v23 = vsub.s32 15, %v33_v21 }
 0x12b   :  { %v38_v24 = vrot.slane %v34_v23, %v37_v22 }
 0x12d   :  { %40 = vst.msk [vmem:[#allocation2] sm:$0x1] %vm39_vm3, %v38_v24 }
 0x12e   :  { %68 = shalt.err (!%p65_p4)
}
 0x12f   :  { %50 = dma.vmem_to_hbm [thread:$0]  %s48_s8, 16, %s98_s1, [#allocation3]  }
 0x130   :  { %77 = dma.done.wait [#allocation3], 16  }
 0x131   :  { %78 = vsyncadd [#allocation3], 4294967280 }
 0x132   :  { %54 = vsyncpa [#allocation3], 1 }

</bundles_post_ra>
